<compile_context>
chip_gen: v7x
topology: tpu7x:2x2x1
jax: 0.10.0
libtpu: 0.0.40
codegen_flags: <defaults>
</compile_context>

<pallas_src>
import functools

import jax
import jax.numpy as jnp
from jax.experimental import pallas as pl
from jax.experimental.pallas import tpu as pltpu

LN_EPS = 1e-5
_INV_SQRT2 = 0.7071067811865476


def _round_up(x, m):
    return ((x + m - 1) // m) * m


def _gelu_exact(x):
    # nn.GELU() default = exact erf formulation.
    return 0.5 * x * (1.0 + jax.lax.erf(x * _INV_SQRT2))


def _layernorm_padded(x, gamma, beta, n_real):
    # x has zero-padded columns beyond n_real, so the sums only see the real
    # columns; dividing by n_real reproduces LayerNorm over the true width.
    s = jnp.sum(x, axis=-1, keepdims=True)
    ss = jnp.sum(x * x, axis=-1, keepdims=True)
    mean = s * (1.0 / n_real)
    var = jnp.maximum(ss * (1.0 / n_real) - mean * mean, 0.0)
    inv = jax.lax.rsqrt(var + LN_EPS)
    # gamma/beta are zero in padded columns -> padded outputs stay exactly 0.
    return (x - mean) * inv * gamma + beta


def _prior_kernel(
    cond_ref,
    w1_ref, b1_ref, g1_ref, be1_ref,
    w2_ref, b2_ref, g2_ref, be2_ref,
    wh_ref, bh_ref,
    out_ref,
    *, hidden_real, latent_pad,
):
    cond = cond_ref[...]                                            # bf16 (Tb, Cp)

    # ---- block 1: Linear -> LayerNorm -> GELU -> (Dropout = identity) ----
    h = jnp.dot(cond, w1_ref[...], preferred_element_type=jnp.float32) + b1_ref[...]
    h = _gelu_exact(_layernorm_padded(h, g1_ref[...], be1_ref[...], hidden_real))

    # ---- block 2 ----
    h = jnp.dot(h.astype(jnp.bfloat16), w2_ref[...],
                preferred_element_type=jnp.float32) + b2_ref[...]
    h = _gelu_exact(_layernorm_padded(h, g2_ref[...], be2_ref[...], hidden_real))

    # ---- fused heads: [mu | logvar] in one lane-dense matmul + one store ----
    head = jnp.dot(h.astype(jnp.bfloat16), wh_ref[...],
                   preferred_element_type=jnp.float32) + bh_ref[...]
    col = jax.lax.broadcasted_iota(jnp.int32, head.shape, 1)
    out_ref[...] = jnp.where(col >= latent_pad,
                             jnp.clip(head, -10.0, 2.0), head)


def pack_params(params, condition_dim, hidden_dim, latent_dim):
    """Pad params to lane-friendly sizes, reshape 1-D params to (1, dim),
    fuse mu/logvar head weights, and cast matmul weights to bf16."""
    C, H, L = condition_dim, hidden_dim, latent_dim
    Cp, Hp, Lp = _round_up(C, 128), _round_up(H, 128), _round_up(L, 128)

    def pad2(w, r, c):
        return jnp.zeros((r, c), jnp.float32).at[: w.shape[0], : w.shape[1]].set(w)

    def pad_row(v, c):
        return jnp.zeros((1, c), jnp.float32).at[0, : v.shape[0]].set(v)

    w_head = jnp.zeros((Hp, 2 * Lp), jnp.float32)
    w_head = w_head.at[:H, :L].set(params["w_mu"]).at[:H, Lp:Lp + L].set(params["w_lv"])
    b_head = jnp.zeros((1, 2 * Lp), jnp.float32)
    b_head = b_head.at[0, :L].set(params["b_mu"]).at[0, Lp:Lp + L].set(params["b_lv"])

    return {
        "w1": pad2(params["w1"], Cp, Hp).astype(jnp.bfloat16),
        "b1": pad_row(params["b1"], Hp),
        "ln1_w": pad_row(params["ln1_w"], Hp),
        "ln1_b": pad_row(params["ln1_b"], Hp),
        "w2": pad2(params["w2"], Hp, Hp).astype(jnp.bfloat16),
        "b2": pad_row(params["b2"], Hp),
        "ln2_w": pad_row(params["ln2_w"], Hp),
        "ln2_b": pad_row(params["ln2_b"], Hp),
        "w_head": w_head.astype(jnp.bfloat16),
        "b_head": b_head,
    }


@functools.partial(jax.jit, static_argnames=("hidden_dim", "latent_dim", "tile_b_max"))
def conditional_prior_forward(condition, packed, *, hidden_dim, latent_dim,
                              tile_b_max=256):
    """condition: [B, condition_dim] f32 -> (mu [B, latent], logvar [B, latent])."""
    B, C = condition.shape
    Cp, Hp = packed["w1"].shape
    Lp2 = packed["w_head"].shape[1]
    Lp = Lp2 // 2

    # Batch tiling: keep tiles modest so resident weights + double-buffered
    # activation tiles fit scoped VMEM on all of v5e / v6e / v7x.
    tile_b = min(tile_b_max, _round_up(B, 8))
    grid_b = pl.cdiv(B, tile_b)
    b_pad = grid_b * tile_b

    cond_p = jnp.zeros((b_pad, Cp), jnp.float32).at[:B, :C].set(condition)
    cond_p = cond_p.astype(jnp.bfloat16)

    row = lambda i: (i, 0)        # batch-tiled operands
    const = lambda i: (0, 0)      # VMEM-resident weights / biases

    in_specs = [
        pl.BlockSpec((tile_b, Cp), row),
        pl.BlockSpec((Cp, Hp), const),
        pl.BlockSpec((1, Hp), const),
        pl.BlockSpec((1, Hp), const),
        pl.BlockSpec((1, Hp), const),
        pl.BlockSpec((Hp, Hp), const),
        pl.BlockSpec((1, Hp), const),
        pl.BlockSpec((1, Hp), const),
        pl.BlockSpec((1, Hp), const),
        pl.BlockSpec((Hp, Lp2), const),
        pl.BlockSpec((1, Lp2), const),
    ]
    out_specs = pl.BlockSpec((tile_b, Lp2), row)

    # VMEM budget (bf16 weights + f32 small params + double-buffered act tiles
    # + f32 intermediates), with 2x headroom, capped at v7x's 64 MiB physical.
    weight_bytes = 2 * (Cp * Hp + Hp * Hp + Hp * Lp2)
    small_bytes = 4 * (6 * Hp + Lp2)
    act_bytes = 2 * (2 * tile_b * Cp) + 2 * (4 * tile_b * Lp2) + 6 * 4 * tile_b * Hp
    vmem_limit = int(min(64 * 1024 * 1024,
                         max(16 * 1024 * 1024,
                             2 * (weight_bytes + small_bytes + act_bytes))))

    cost = pl.CostEstimate(
        flops=2 * b_pad * (Cp * Hp + Hp * Hp + Hp * Lp2),
        transcendentals=2 * b_pad * Hp,                       # erf in the two GELUs
        bytes_accessed=weight_bytes + small_bytes + 2 * b_pad * Cp + 4 * b_pad * Lp2,
    )

    kernel = functools.partial(_prior_kernel, hidden_real=hidden_dim, latent_pad=Lp)

    out = pl.pallas_call(
        kernel,
        out_shape=jax.ShapeDtypeStruct((b_pad, Lp2), jnp.float32),
        grid=(grid_b,),
        in_specs=in_specs,
        out_specs=out_specs,
        compiler_params=pltpu.CompilerParams(
            dimension_semantics=("parallel",),
            vmem_limit_bytes=vmem_limit,
        ),
        cost_estimate=cost,
    )(
        cond_p,
        packed["w1"], packed["b1"], packed["ln1_w"], packed["ln1_b"],
        packed["w2"], packed["b2"], packed["ln2_w"], packed["ln2_b"],
        packed["w_head"], packed["b_head"],
    )

    mu = out[:B, :latent_dim]
    logvar = out[:B, Lp:Lp + latent_dim]
    return mu, logvar


def init_params(key, condition_dim, latent_dim, hidden_dim):
    """Deterministic synthetic parameters (PyTorch-style init, stored [in, out])."""
    ks = jax.random.split(key, 4)

    def lin(k, fan_in, fan_out):
        bound = 1.0 / jnp.sqrt(fan_in)
        kw, kb = jax.random.split(k)
        w = jax.random.uniform(kw, (fan_in, fan_out), jnp.float32, -bound, bound)
        b = jax.random.uniform(kb, (fan_out,), jnp.float32, -bound, bound)
        return w, b

    w1, b1 = lin(ks[0], condition_dim, hidden_dim)
    w2, b2 = lin(ks[1], hidden_dim, hidden_dim)
    w_mu, b_mu = lin(ks[2], hidden_dim, latent_dim)
    w_lv, b_lv = lin(ks[3], hidden_dim, latent_dim)

    return {
        "w1": w1, "b1": b1,
        "ln1_w": jnp.ones((hidden_dim,), jnp.float32),
        "ln1_b": jnp.zeros((hidden_dim,), jnp.float32),
        "w2": w2, "b2": b2,
        "ln2_w": jnp.ones((hidden_dim,), jnp.float32),
        "ln2_b": jnp.zeros((hidden_dim,), jnp.float32),
        "w_mu": w_mu, "b_mu": b_mu, "w_lv": w_lv, "b_lv": b_lv,
    }


def reference_forward(condition, params):
    """Pure-JAX reference mirroring the PyTorch module in eval mode (with the
    same bf16 matmul-operand precision the kernel uses, f32 accumulation)."""
    def mm(a, w):
        return jnp.dot(a.astype(jnp.bfloat16), w.astype(jnp.bfloat16),
                       preferred_element_type=jnp.float32)

    def ln(x, w, b):
        mean = jnp.mean(x, axis=-1, keepdims=True)
        var = jnp.mean(jnp.square(x - mean), axis=-1, keepdims=True)
        return (x - mean) * jax.lax.rsqrt(var + LN_EPS) * w + b

    h = mm(condition, params["w1"]) + params["b1"]
    h = _gelu_exact(ln(h, params["ln1_w"], params["ln1_b"]))
    h = mm(h, params["w2"]) + params["b2"]
    h = _gelu_exact(ln(h, params["ln2_w"], params["ln2_b"]))
    mu = mm(h, params["w_mu"]) + params["b_mu"]
    logvar = jnp.clip(mm(h, params["w_lv"]) + params["b_lv"], -10.0, 2.0)
    return mu, logvar


if __name__ == "__main__":
    # Small shapes consistent with the module's forward: [B, condition_dim].
    batch, condition_dim, latent_dim, hidden_dim = 2, 16, 8, 32

    key = jax.random.PRNGKey(0)
    k_params, k_x = jax.random.split(key)
    params = init_params(k_params, condition_dim, latent_dim, hidden_dim)
    condition = jax.random.normal(k_x, (batch, condition_dim), jnp.float32)

    packed = pack_params(params, condition_dim, hidden_dim, latent_dim)
    mu, logvar = conditional_prior_forward(
        condition, packed, hidden_dim=hidden_dim, latent_dim=latent_dim)
    jax.block_until_ready((mu, logvar))

    mu_ref, logvar_ref = reference_forward(condition, params)
    assert mu.shape == (batch, latent_dim) and logvar.shape == (batch, latent_dim)
    assert jnp.allclose(mu, mu_ref, atol=2e-3, rtol=2e-3)
    assert jnp.allclose(logvar, logvar_ref, atol=2e-3, rtol=2e-3)
    assert bool(jnp.all(logvar <= 2.0)) and bool(jnp.all(logvar >= -10.0))

    print("KERNEL_OK")
</pallas_src>

<mosaic_0001>
module attributes {stable_mosaic.version = 11 : i64} {
  func.func @_prior_kernel(%arg0: i32, %arg1: memref<8x128xbf16, #tpu.memory_space<vmem>>, %arg2: memref<128x128xbf16, #tpu.memory_space<vmem>>, %arg3: memref<1x128xf32, #tpu.memory_space<vmem>>, %arg4: memref<1x128xf32, #tpu.memory_space<vmem>>, %arg5: memref<1x128xf32, #tpu.memory_space<vmem>>, %arg6: memref<128x128xbf16, #tpu.memory_space<vmem>>, %arg7: memref<1x128xf32, #tpu.memory_space<vmem>>, %arg8: memref<1x128xf32, #tpu.memory_space<vmem>>, %arg9: memref<1x128xf32, #tpu.memory_space<vmem>>, %arg10: memref<128x256xbf16, #tpu.memory_space<vmem>>, %arg11: memref<1x256xf32, #tpu.memory_space<vmem>>, %arg12: memref<8x256xf32, #tpu.memory_space<vmem>>) attributes {dimension_semantics = [#tpu.dimension_semantics<parallel>], iteration_bounds = array<i64: 1>, scalar_prefetch = 0 : i64, scratch_operands = 0 : i64, tpu.core_type = #tpu.core_type<tc>, window_params = [{transform_indices = @transform_0, window_bounds = array<i64: 8, 128>}, {pipeline_mode = #tpu.pipeline_mode<synchronous>, transform_indices = @transform_1, window_bounds = array<i64: 128, 128>}, {pipeline_mode = #tpu.pipeline_mode<synchronous>, transform_indices = @transform_2, window_bounds = array<i64: 1, 128>}, {pipeline_mode = #tpu.pipeline_mode<synchronous>, transform_indices = @transform_3, window_bounds = array<i64: 1, 128>}, {pipeline_mode = #tpu.pipeline_mode<synchronous>, transform_indices = @transform_4, window_bounds = array<i64: 1, 128>}, {pipeline_mode = #tpu.pipeline_mode<synchronous>, transform_indices = @transform_5, window_bounds = array<i64: 128, 128>}, {pipeline_mode = #tpu.pipeline_mode<synchronous>, transform_indices = @transform_6, window_bounds = array<i64: 1, 128>}, {pipeline_mode = #tpu.pipeline_mode<synchronous>, transform_indices = @transform_7, window_bounds = array<i64: 1, 128>}, {pipeline_mode = #tpu.pipeline_mode<synchronous>, transform_indices = @transform_8, window_bounds = array<i64: 1, 128>}, {pipeline_mode = #tpu.pipeline_mode<synchronous>, transform_indices = @transform_9, window_bounds = array<i64: 128, 256>}, {pipeline_mode = #tpu.pipeline_mode<synchronous>, transform_indices = @transform_10, window_bounds = array<i64: 1, 256>}, {transform_indices = @transform_11, window_bounds = array<i64: 8, 256>}]} {
    %c0 = arith.constant 0 : index
    %c0_0 = arith.constant 0 : index
    %0 = vector.load %arg1[%c0, %c0_0] : memref<8x128xbf16, #tpu.memory_space<vmem>>, vector<8x128xbf16>
    %c0_1 = arith.constant 0 : index
    %c0_2 = arith.constant 0 : index
    %1 = vector.load %arg2[%c0_1, %c0_2] : memref<128x128xbf16, #tpu.memory_space<vmem>>, vector<128x128xbf16>
    %cst = arith.constant dense<0.000000e+00> : vector<8x128xf32>
    %2 = tpu.matmul %0, %1, %cst {dimension_numbers = #tpu.dot_dimension_numbers<[1], [0], [0], [1], [0, 0, 1, 1], [], []>} : vector<8x128xbf16>, vector<128x128xbf16>, vector<8x128xf32> -> vector<8x128xf32>
    %c0_3 = arith.constant 0 : index
    %c0_4 = arith.constant 0 : index
    %3 = vector.load %arg3[%c0_3, %c0_4] : memref<1x128xf32, #tpu.memory_space<vmem>>, vector<1x128xf32>
    %4 = vector.broadcast %3 : vector<1x128xf32> to vector<8x128xf32>
    %5 = arith.addf %2, %4 : vector<8x128xf32>
    %c0_5 = arith.constant 0 : index
    %c0_6 = arith.constant 0 : index
    %6 = vector.load %arg4[%c0_5, %c0_6] : memref<1x128xf32, #tpu.memory_space<vmem>>, vector<1x128xf32>
    %c0_7 = arith.constant 0 : index
    %c0_8 = arith.constant 0 : index
    %7 = vector.load %arg5[%c0_7, %c0_8] : memref<1x128xf32, #tpu.memory_space<vmem>>, vector<1x128xf32>
    %cst_9 = arith.constant dense<0.000000e+00> : vector<8xf32>
    %8 = vector.multi_reduction <add>, %5, %cst_9 [1] : vector<8x128xf32> to vector<8xf32>
    %9 = vector.shape_cast %8 : vector<8xf32> to vector<8x1xf32>
    %10 = arith.mulf %5, %5 : vector<8x128xf32>
    %cst_10 = arith.constant dense<0.000000e+00> : vector<8xf32>
    %11 = vector.multi_reduction <add>, %10, %cst_10 [1] : vector<8x128xf32> to vector<8xf32>
    %12 = vector.shape_cast %11 : vector<8xf32> to vector<8x1xf32>
    %cst_11 = arith.constant 3.125000e-02 : f32
    %13 = vector.broadcast %cst_11 : f32 to vector<8x1xf32>
    %14 = arith.mulf %9, %13 : vector<8x1xf32>
    %cst_12 = arith.constant 3.125000e-02 : f32
    %15 = vector.broadcast %cst_12 : f32 to vector<8x1xf32>
    %16 = arith.mulf %12, %15 : vector<8x1xf32>
    %17 = arith.mulf %14, %14 : vector<8x1xf32>
    %18 = arith.subf %16, %17 : vector<8x1xf32>
    %cst_13 = arith.constant 0.000000e+00 : f32
    %19 = vector.broadcast %cst_13 : f32 to vector<8x1xf32>
    %20 = arith.maximumf %18, %19 : vector<8x1xf32>
    %cst_14 = arith.constant 9.99999974E-6 : f32
    %21 = vector.broadcast %cst_14 : f32 to vector<8x1xf32>
    %22 = arith.addf %20, %21 : vector<8x1xf32>
    %23 = math.rsqrt %22 : vector<8x1xf32>
    %24 = vector.broadcast %14 : vector<8x1xf32> to vector<8x128xf32>
    %25 = arith.subf %5, %24 : vector<8x128xf32>
    %26 = vector.broadcast %23 : vector<8x1xf32> to vector<8x128xf32>
    %27 = arith.mulf %25, %26 : vector<8x128xf32>
    %28 = vector.broadcast %6 : vector<1x128xf32> to vector<8x128xf32>
    %29 = arith.mulf %27, %28 : vector<8x128xf32>
    %30 = vector.broadcast %7 : vector<1x128xf32> to vector<8x128xf32>
    %31 = arith.addf %29, %30 : vector<8x128xf32>
    %cst_15 = arith.constant 5.000000e-01 : f32
    %32 = vector.broadcast %cst_15 : f32 to vector<8x128xf32>
    %33 = arith.mulf %32, %31 : vector<8x128xf32>
    %cst_16 = arith.constant 0.707106769 : f32
    %34 = vector.broadcast %cst_16 : f32 to vector<8x128xf32>
    %35 = arith.mulf %31, %34 : vector<8x128xf32>
    %36 = math.erf %35 : vector<8x128xf32>
    %cst_17 = arith.constant 1.000000e+00 : f32
    %37 = vector.broadcast %cst_17 : f32 to vector<8x128xf32>
    %38 = arith.addf %37, %36 : vector<8x128xf32>
    %39 = arith.mulf %33, %38 : vector<8x128xf32>
    %40 = arith.truncf %39 : vector<8x128xf32> to vector<8x128xbf16>
    %c0_18 = arith.constant 0 : index
    %c0_19 = arith.constant 0 : index
    %41 = vector.load %arg6[%c0_18, %c0_19] : memref<128x128xbf16, #tpu.memory_space<vmem>>, vector<128x128xbf16>
    %cst_20 = arith.constant dense<0.000000e+00> : vector<8x128xf32>
    %42 = tpu.matmul %40, %41, %cst_20 {dimension_numbers = #tpu.dot_dimension_numbers<[1], [0], [0], [1], [0, 0, 1, 1], [], []>} : vector<8x128xbf16>, vector<128x128xbf16>, vector<8x128xf32> -> vector<8x128xf32>
    %c0_21 = arith.constant 0 : index
    %c0_22 = arith.constant 0 : index
    %43 = vector.load %arg7[%c0_21, %c0_22] : memref<1x128xf32, #tpu.memory_space<vmem>>, vector<1x128xf32>
    %44 = vector.broadcast %43 : vector<1x128xf32> to vector<8x128xf32>
    %45 = arith.addf %42, %44 : vector<8x128xf32>
    %c0_23 = arith.constant 0 : index
    %c0_24 = arith.constant 0 : index
    %46 = vector.load %arg8[%c0_23, %c0_24] : memref<1x128xf32, #tpu.memory_space<vmem>>, vector<1x128xf32>
    %c0_25 = arith.constant 0 : index
    %c0_26 = arith.constant 0 : index
    %47 = vector.load %arg9[%c0_25, %c0_26] : memref<1x128xf32, #tpu.memory_space<vmem>>, vector<1x128xf32>
    %cst_27 = arith.constant dense<0.000000e+00> : vector<8xf32>
    %48 = vector.multi_reduction <add>, %45, %cst_27 [1] : vector<8x128xf32> to vector<8xf32>
    %49 = vector.shape_cast %48 : vector<8xf32> to vector<8x1xf32>
    %50 = arith.mulf %45, %45 : vector<8x128xf32>
    %cst_28 = arith.constant dense<0.000000e+00> : vector<8xf32>
    %51 = vector.multi_reduction <add>, %50, %cst_28 [1] : vector<8x128xf32> to vector<8xf32>
    %52 = vector.shape_cast %51 : vector<8xf32> to vector<8x1xf32>
    %cst_29 = arith.constant 3.125000e-02 : f32
    %53 = vector.broadcast %cst_29 : f32 to vector<8x1xf32>
    %54 = arith.mulf %49, %53 : vector<8x1xf32>
    %cst_30 = arith.constant 3.125000e-02 : f32
    %55 = vector.broadcast %cst_30 : f32 to vector<8x1xf32>
    %56 = arith.mulf %52, %55 : vector<8x1xf32>
    %57 = arith.mulf %54, %54 : vector<8x1xf32>
    %58 = arith.subf %56, %57 : vector<8x1xf32>
    %cst_31 = arith.constant 0.000000e+00 : f32
    %59 = vector.broadcast %cst_31 : f32 to vector<8x1xf32>
    %60 = arith.maximumf %58, %59 : vector<8x1xf32>
    %cst_32 = arith.constant 9.99999974E-6 : f32
    %61 = vector.broadcast %cst_32 : f32 to vector<8x1xf32>
    %62 = arith.addf %60, %61 : vector<8x1xf32>
    %63 = math.rsqrt %62 : vector<8x1xf32>
    %64 = vector.broadcast %54 : vector<8x1xf32> to vector<8x128xf32>
    %65 = arith.subf %45, %64 : vector<8x128xf32>
    %66 = vector.broadcast %63 : vector<8x1xf32> to vector<8x128xf32>
    %67 = arith.mulf %65, %66 : vector<8x128xf32>
    %68 = vector.broadcast %46 : vector<1x128xf32> to vector<8x128xf32>
    %69 = arith.mulf %67, %68 : vector<8x128xf32>
    %70 = vector.broadcast %47 : vector<1x128xf32> to vector<8x128xf32>
    %71 = arith.addf %69, %70 : vector<8x128xf32>
    %cst_33 = arith.constant 5.000000e-01 : f32
    %72 = vector.broadcast %cst_33 : f32 to vector<8x128xf32>
    %73 = arith.mulf %72, %71 : vector<8x128xf32>
    %cst_34 = arith.constant 0.707106769 : f32
    %74 = vector.broadcast %cst_34 : f32 to vector<8x128xf32>
    %75 = arith.mulf %71, %74 : vector<8x128xf32>
    %76 = math.erf %75 : vector<8x128xf32>
    %cst_35 = arith.constant 1.000000e+00 : f32
    %77 = vector.broadcast %cst_35 : f32 to vector<8x128xf32>
    %78 = arith.addf %77, %76 : vector<8x128xf32>
    %79 = arith.mulf %73, %78 : vector<8x128xf32>
    %80 = arith.truncf %79 : vector<8x128xf32> to vector<8x128xbf16>
    %c0_36 = arith.constant 0 : index
    %c0_37 = arith.constant 0 : index
    %81 = vector.load %arg10[%c0_36, %c0_37] : memref<128x256xbf16, #tpu.memory_space<vmem>>, vector<128x256xbf16>
    %cst_38 = arith.constant dense<0.000000e+00> : vector<8x256xf32>
    %82 = tpu.matmul %80, %81, %cst_38 {dimension_numbers = #tpu.dot_dimension_numbers<[1], [0], [0], [1], [0, 0, 1, 1], [], []>} : vector<8x128xbf16>, vector<128x256xbf16>, vector<8x256xf32> -> vector<8x256xf32>
    %c0_39 = arith.constant 0 : index
    %c0_40 = arith.constant 0 : index
    %83 = vector.load %arg11[%c0_39, %c0_40] : memref<1x256xf32, #tpu.memory_space<vmem>>, vector<1x256xf32>
    %84 = vector.broadcast %83 : vector<1x256xf32> to vector<8x256xf32>
    %85 = arith.addf %82, %84 : vector<8x256xf32>
    %86 = tpu.iota {dimensions = array<i32: 1>} : vector<8x256xi32>
    %c128_i32 = arith.constant 128 : i32
    %87 = vector.broadcast %c128_i32 : i32 to vector<8x256xi32>
    %88 = arith.cmpi sge, %86, %87 : vector<8x256xi32>
    %cst_41 = arith.constant -1.000000e+01 : f32
    %cst_42 = arith.constant 2.000000e+00 : f32
    %89 = vector.broadcast %cst_41 : f32 to vector<8x256xf32>
    %90 = arith.maximumf %89, %85 : vector<8x256xf32>
    %91 = vector.broadcast %cst_42 : f32 to vector<8x256xf32>
    %92 = arith.minimumf %91, %90 : vector<8x256xf32>
    %93 = arith.select %88, %92, %85 : vector<8x256xi1>, vector<8x256xf32>
    %c0_43 = arith.constant 0 : index
    %c0_44 = arith.constant 0 : index
    %94 = vector.load %arg12[%c0_43, %c0_44] : memref<8x256xf32, #tpu.memory_space<vmem>>, vector<8x256xf32>
    tpu.vector_store %arg12[%c0_43, %c0_44], %93 {strides = array<i32>} : memref<8x256xf32, #tpu.memory_space<vmem>>, vector<8x256xf32>,
    return
  }
  func.func @transform_0(%arg0: i32) -> (i32, i32) {
    %c0_i32 = arith.constant 0 : i32
    %c0_i32_0 = arith.constant 0 : i32
    return %arg0, %c0_i32 : i32, i32
  }
  func.func @transform_1(%arg0: i32) -> (i32, i32) {
    %c0_i32 = arith.constant 0 : i32
    %c0_i32_0 = arith.constant 0 : i32
    %c0_i32_1 = arith.constant 0 : i32
    return %c0_i32, %c0_i32_0 : i32, i32
  }
  func.func @transform_2(%arg0: i32) -> (i32, i32) {
    %c0_i32 = arith.constant 0 : i32
    %c0_i32_0 = arith.constant 0 : i32
    %c0_i32_1 = arith.constant 0 : i32
    return %c0_i32, %c0_i32_0 : i32, i32
  }
  func.func @transform_3(%arg0: i32) -> (i32, i32) {
    %c0_i32 = arith.constant 0 : i32
    %c0_i32_0 = arith.constant 0 : i32
    %c0_i32_1 = arith.constant 0 : i32
    return %c0_i32, %c0_i32_0 : i32, i32
  }
  func.func @transform_4(%arg0: i32) -> (i32, i32) {
    %c0_i32 = arith.constant 0 : i32
    %c0_i32_0 = arith.constant 0 : i32
    %c0_i32_1 = arith.constant 0 : i32
    return %c0_i32, %c0_i32_0 : i32, i32
  }
  func.func @transform_5(%arg0: i32) -> (i32, i32) {
    %c0_i32 = arith.constant 0 : i32
    %c0_i32_0 = arith.constant 0 : i32
    %c0_i32_1 = arith.constant 0 : i32
    return %c0_i32, %c0_i32_0 : i32, i32
  }
  func.func @transform_6(%arg0: i32) -> (i32, i32) {
    %c0_i32 = arith.constant 0 : i32
    %c0_i32_0 = arith.constant 0 : i32
    %c0_i32_1 = arith.constant 0 : i32
    return %c0_i32, %c0_i32_0 : i32, i32
  }
  func.func @transform_7(%arg0: i32) -> (i32, i32) {
    %c0_i32 = arith.constant 0 : i32
    %c0_i32_0 = arith.constant 0 : i32
    %c0_i32_1 = arith.constant 0 : i32
    return %c0_i32, %c0_i32_0 : i32, i32
  }
  func.func @transform_8(%arg0: i32) -> (i32, i32) {
    %c0_i32 = arith.constant 0 : i32
    %c0_i32_0 = arith.constant 0 : i32
    %c0_i32_1 = arith.constant 0 : i32
    return %c0_i32, %c0_i32_0 : i32, i32
  }
  func.func @transform_9(%arg0: i32) -> (i32, i32) {
    %c0_i32 = arith.constant 0 : i32
    %c0_i32_0 = arith.constant 0 : i32
    %c0_i32_1 = arith.constant 0 : i32
    return %c0_i32, %c0_i32_0 : i32, i32
  }
  func.func @transform_10(%arg0: i32) -> (i32, i32) {
    %c0_i32 = arith.constant 0 : i32
    %c0_i32_0 = arith.constant 0 : i32
    %c0_i32_1 = arith.constant 0 : i32
    return %c0_i32, %c0_i32_0 : i32, i32
  }
  func.func @transform_11(%arg0: i32) -> (i32, i32) {
    %c0_i32 = arith.constant 0 : i32
    %c0_i32_0 = arith.constant 0 : i32
    return %arg0, %c0_i32 : i32, i32
  }
}

</mosaic_0001>

<bundles_post_ra>
// kernel: conditional_prior_forward.1
= control target key start
LH: loop header
LB: loop body
LE: loop exit
PB: predicated region body
PF: predicated region fallthrough
CT: control target
= control target key end

     0   :  { %16 = vsyncpa [#allocation3], 0  ;;  %s910_s0 = inlined_call_operand.vmem [shape: bf16[8,128], index: 0, kind: input, shape index: {}]   ;;  %s911_s1 = inlined_call_operand.hbm [shape: bf16[128,128], index: 1, kind: input, shape index: {}]   ;;  %s912_s2 = inlined_call_operand.vmem [shape: f32[1,128], index: 2, kind: input, shape index: {}]   ;;  %s913_s3 = inlined_call_operand.vmem [shape: f32[1,128], index: 3, kind: input, shape index: {}]   ;;  %s914_s4 = inlined_call_operand.vmem [shape: f32[1,128], index: 4, kind: input, shape index: {}]   ;;  %s915_s5 = inlined_call_operand.hbm [shape: bf16[128,128], index: 5, kind: input, shape index: {}]   ;;  %s916_s6 = inlined_call_operand.vmem [shape: f32[1,128], index: 6, kind: input, shape index: {}]   ;;  %s917_s7 = inlined_call_operand.vmem [shape: f32[1,128], index: 7, kind: input, shape index: {}]   ;;  %s918_s8 = inlined_call_operand.vmem [shape: f32[1,128], index: 8, kind: input, shape index: {}]   ;;  %s919_s9 = inlined_call_operand.hbm [shape: bf16[128,256], index: 9, kind: input, shape index: {}]   ;;  %s920_s10 = inlined_call_operand.vmem [shape: f32[1,256], index: 10, kind: input, shape index: {}]   ;;  %s921_s11 = inlined_call_operand.vmem [shape: f32[8,256], index: 11, kind: output, shape index: {}]  }
   0x1   :  { %17 = vsyncpa [#allocation5], 0  ;;  %s767_s17 = smov [#allocation4]   ;;  %s768_s19 = smov [#allocation2]  }
   0x2   :  { %s43_s18 = sshll.u32 %s767_s17, 4  ;;  %s25_s20 = sshll.u32 %s768_s19, 4  ;;  %s44_s18 = int_to_ptr.vmem [resolvable:$true] %s43_s18  ;;  %s837_s20 = int_to_ptr.vmem [resolvable:$true] %s25_s20 }
   0x3   :  { %s697_s23 = scalar_lea.hbm %s915_s5, 1024 }
   0x4   :  { %p698_p0 = scmp.ne.s32.totalorder %s915_s5, %s697_s23  ;;  %p701_p1 = scmp.lt.u32.totalorder %s697_s23, %s915_s5 }
   0x6   :  { %p703_p2 = pnand %p701_p1, %p698_p0 }
   0x8   :  { %706 = shalt.err (!%p703_p2)
}
   0x9   :  { %s707_s28 = scalar_lea.vmem %s44_s18, 1024  ;;  %p712_p4 = scmp.lt.s32.totalorder %s44_s18, %s44_s18 }
   0xa   :  { %p708_p3 = scmp.ne.s32.totalorder %s44_s18, %s707_s28  ;;  %p713_p5 = scmp.lt.s32.totalorder %s707_s28, %s707_s28 }
   0xc   :  { %p714_p6 = por %p713_p5, %p712_p4 }
   0xe   :  { %p715_p7 = pnand %p714_p6, %p708_p3 }
  0x10   :  { %718 = shalt.err (!%p715_p7)
}
  0x11   :  { %s769_s29 = smov 64   ;;  %s770_s30 = smov 4  }
  0x12   :  { %49 = dma.hbm_to_vmem [thread:$0]  %s915_s5, 1024, %s44_s18, [#allocation5], %s769_s29, %s769_s29, %s770_s30  }
  0x13   :  { %s719_s16 = scalar_lea.hbm %s911_s1, 1024 }
  0x14   :  { %p720_p8 = scmp.ne.s32.totalorder %s911_s1, %s719_s16  ;;  %p723_p9 = scmp.lt.u32.totalorder %s719_s16, %s911_s1 }
  0x16   :  { %p725_p10 = pnand %p723_p9, %p720_p8 }
  0x18   :  { %728 = shalt.err (!%p725_p10)
}
  0x19   :  { %s729_s23 = scalar_lea.vmem %s837_s20, 1024  ;;  %p734_p12 = scmp.lt.s32.totalorder %s837_s20, %s837_s20 }
  0x1a   :  { %p730_p11 = scmp.ne.s32.totalorder %s837_s20, %s729_s23  ;;  %p735_p13 = scmp.lt.s32.totalorder %s729_s23, %s729_s23 }
  0x1c   :  { %p736_p0 = por %p735_p13, %p734_p12 }
  0x1e   :  { %p737_p1 = pnand %p736_p0, %p730_p11 }
  0x20   :  { %740 = shalt.err (!%p737_p1)
}
  0x21   :  { %31 = dma.hbm_to_vmem [thread:$0]  %s911_s1, 1024, %s837_s20, [#allocation3], %s769_s29, %s769_s29, %s770_s30  }
  0x22   :  { %s771_s24 = smov [#allocation6]   ;;  %s741_s28 = scalar_lea.hbm %s919_s9, 2048 }
  0x23   :  { %s61_s25 = sshll.u32 %s771_s24, 4  ;;  %p742_p2 = scmp.ne.s32.totalorder %s919_s9, %s741_s28  ;;  %s62_s25 = int_to_ptr.vmem [resolvable:$true] %s61_s25 }
  0x24   :  { %p745_p3 = scmp.lt.u32.totalorder %s741_s28, %s919_s9 }
  0x26   :  { %p747_p4 = pnand %p745_p3, %p742_p2 }
  0x28   :  { %750 = shalt.err (!%p747_p4)
}
  0x29   :  { %s751_s16 = scalar_lea.vmem %s62_s25, 2048  ;;  %p756_p6 = scmp.lt.s32.totalorder %s62_s25, %s62_s25 }
  0x2a   :  { %p752_p5 = scmp.ne.s32.totalorder %s62_s25, %s751_s16  ;;  %p757_p7 = scmp.lt.s32.totalorder %s751_s16, %s751_s16 }
  0x2c   :  { %p758_p8 = por %p757_p7, %p756_p6 }
  0x2e   :  { %p759_p9 = pnand %p758_p8, %p752_p5 }
  0x30   :  { %762 = shalt.err (!%p759_p9)
}
  0x31   :  { %s772_s1 = smov 128   ;;  %s773_s20 = smov 8  }
  0x32   :  { %67 = dma.hbm_to_vmem [thread:$0]  %s919_s9, 2048, %s62_s25, [#allocation5], %s772_s1, %s772_s1, %s773_s20  }
  0x33   :  { %763 = dma.done.wait [#allocation3], 1024  }
  0x34   :  { %764 = vsyncadd [#allocation3], 4294966272 }
  0x35   :  { %765 = dma.done.wait [#allocation5], 3072  }
  0x36   :  { %766 = vsyncadd [#allocation5], 4294964224  ;;  %v774_v0 = vmov 0.0   ;;  %vm775_vm0 = vmmov 0   ;;  %v649_v1 = vld [vmem:[#allocation2] sm:$0xff]   ;;  %v650_v2 = vld [vmem:[#allocation2 + $0x8] sm:$0xff]  }
  0x37   :  { %599 = vmatprep.subr.bf16.mxu0 %v774_v0  ;;  %615 = vmatprep.mubr.msk.bf16.mxu0 %vm775_vm0, %v774_v0  ;;  %v651_v3 = vld [vmem:[#allocation2 + $0x10] sm:$0xff]   ;;  %v652_v4 = vld [vmem:[#allocation2 + $0x18] sm:$0xff]   ;;  %v653_v5 = vld [vmem:[#allocation2 + $0x20] sm:$0xff]   ;;  %v776_v62 = vmov 0  }
  0x38   :  { %619 = vmatprep.subr.bf16.mxu1 %v774_v0  ;;  %635 = vmatprep.mubr.msk.bf16.mxu1 %vm775_vm0, %v774_v0  ;;  %v654_v6 = vld [vmem:[#allocation2 + $0x28] sm:$0xff]   ;;  %v655_v7 = vld [vmem:[#allocation2 + $0x30] sm:$0xff]   ;;  %v656_v8 = vld [vmem:[#allocation2 + $0x38] sm:$0xff]  }
  0x39   :  { %600 = vmatpush3.bf16.msra.mxu0 %v649_v1  ;;  %v80_v9 = vld [vmem:[%s910_s0] sm:$0xf]  ;;  %v657_v17 = vld [vmem:[#allocation4] sm:$0xff]   ;;  %v658_v18 = vld [vmem:[#allocation4 + $0x8] sm:$0xff]  }
  0x3a   :  { %601 = vmatprep.subr.bf16.mxu0 %v774_v0  ;;  %v543_v10 = vld [vmem:[%s912_s2] ss:$0 sm:$0xff]  ;;  %620 = vmatpush3.bf16.msra.mxu1 %v657_v17  ;;  %v660_v20 = vld [vmem:[#allocation4 + $0x18] sm:$0xff]   ;;  %v661_v21 = vld [vmem:[#allocation4 + $0x20] sm:$0xff]  }
  0x3b   :  { %621 = vmatprep.subr.bf16.mxu1 %v774_v0  ;;  %v659_v19 = vld [vmem:[#allocation4 + $0x10] sm:$0xff]   ;;  %v662_v22 = vld [vmem:[#allocation4 + $0x28] sm:$0xff]   ;;  %v664_v24 = vld [vmem:[#allocation4 + $0x38] sm:$0xff]  }
  0x3c   :  { %v663_v23 = vld [vmem:[#allocation4 + $0x30] sm:$0xff]   ;;  %v667_v53 = vld [vmem:[#allocation6 + $0x4] ss:$8 sps:$4 sm:$0xff]   ;;  %v665_v54 = vld [vmem:[#allocation6] ss:$8 sps:$4 sm:$0xff]  }
  0x3d   :  { %602 = vmatpush3.bf16.msra.mxu0 %v650_v2  ;;  %v552_v35 = vld [vmem:[%s913_s3] ss:$0 sm:$0xff]  ;;  %v670_v55 = vld [vmem:[#allocation6 + $0x14] ss:$8 sps:$4 sm:$0xff]   ;;  %v673_v57 = vld [vmem:[#allocation6 + $0x24] ss:$8 sps:$4 sm:$0xff]  }
  0x3e   :  { %603 = vmatprep.subr.bf16.mxu0 %v774_v0  ;;  %622 = vmatpush3.bf16.msra.mxu1 %v658_v18  ;;  %v553_v37 = vld [vmem:[%s914_s4] ss:$0 sm:$0xff]  ;;  %v671_v58 = vld [vmem:[#allocation6 + $0x20] ss:$8 sps:$4 sm:$0xff]   ;;  %v676_v59 = vld [vmem:[#allocation6 + $0x34] ss:$8 sps:$4 sm:$0xff]  }
  0x3f   :  { %623 = vmatprep.subr.bf16.mxu1 %v774_v0  ;;  %v554_v46 = vld [vmem:[%s916_s6] ss:$0 sm:$0xff]  ;;  %v679_v61 = vld [vmem:[#allocation6 + $0x44] ss:$8 sps:$4 sm:$0xff]   ;;  %v677_v63 = vld [vmem:[#allocation6 + $0x40] ss:$8 sps:$4 sm:$0xff]  }
  0x40   :  { %v668_v56 = vld [vmem:[#allocation6 + $0x10] ss:$8 sps:$4 sm:$0xff]   ;;  %v685_v2 = vld [vmem:[#allocation6 + $0x64] ss:$8 sps:$4 sm:$0xff]  }
  0x41   :  { %604 = vmatpush3.bf16.msra.mxu0 %v651_v3  ;;  %v674_v60 = vld [vmem:[#allocation6 + $0x30] ss:$8 sps:$4 sm:$0xff]   ;;  %v683_v3 = vld [vmem:[#allocation6 + $0x60] ss:$8 sps:$4 sm:$0xff]  }
  0x42   :  { %605 = vmatprep.subr.bf16.mxu0 %v774_v0  ;;  %624 = vmatpush3.bf16.msra.mxu1 %v659_v19  ;;  %v680_v1 = vld [vmem:[#allocation6 + $0x50] ss:$8 sps:$4 sm:$0xff]  }
  0x43   :  { %625 = vmatprep.subr.bf16.mxu1 %v774_v0  ;;  %v564_v18 = vld [vmem:[%s918_s8] ss:$0 sm:$0xff] }
  0x45   :  { %606 = vmatpush3.bf16.msra.mxu0 %v652_v4  ;;  %v688_v4 = vld [vmem:[#allocation6 + $0x74] ss:$8 sps:$4 sm:$0xff]  }
  0x46   :  { %607 = vmatprep.subr.bf16.mxu0 %v774_v0  ;;  %626 = vmatpush3.bf16.msra.mxu1 %v660_v20 }
  0x47   :  { %627 = vmatprep.subr.bf16.mxu1 %v774_v0 }
  0x49   :  { %608 = vmatpush3.bf16.msra.mxu0 %v653_v5  ;;  %v686_v5 = vld [vmem:[#allocation6 + $0x70] ss:$8 sps:$4 sm:$0xff]  }
  0x4a   :  { %609 = vmatprep.subr.bf16.mxu0 %v774_v0  ;;  %628 = vmatpush3.bf16.msra.mxu1 %v661_v21 }
  0x4b   :  { %629 = vmatprep.subr.bf16.mxu1 %v774_v0 }
  0x4d   :  { %610 = vmatpush3.bf16.msra.mxu0 %v654_v6 }
  0x4e   :  { %611 = vmatprep.subr.bf16.mxu0 %v774_v0  ;;  %630 = vmatpush3.bf16.msra.mxu1 %v662_v22 }
  0x4f   :  { %631 = vmatprep.subr.bf16.mxu1 %v774_v0 }
  0x51   :  { %612 = vmatpush3.bf16.msra.mxu0 %v655_v7 }
  0x52   :  { %613 = vmatprep.subr.bf16.mxu0 %v774_v0  ;;  %632 = vmatpush3.bf16.msra.mxu1 %v663_v23 }
  0x53   :  { %633 = vmatprep.subr.bf16.mxu1 %v774_v0  ;;  %v682_v0 = vld [vmem:[#allocation6 + $0x54] ss:$8 sps:$4 sm:$0xff]  }
  0x55   :  { %614 = vmatpush3.bf16.msra.mxu0 %v656_v8 }
  0x56   :  { %634 = vmatpush3.bf16.msra.mxu1 %v664_v24  ;;  %483 = vmatprep.subr.bf16.mxu0 %v667_v53 }
  0x58   :  { %616 = vmatmul.mubr.bf16.vlgmr.msra.gmra.mrb[0].mxu0 %v80_v9 }
  0x59   :  { %484 = vmatpush1.bf16.msra.mxu0 %v665_v54  ;;  %515 = vmatprep.mubr.bf16.mxu0 %v776_v62 }
  0x5a   :  { %485 = vmatprep.subr.bf16.mxu0 %v670_v55 }
  0x5d   :  { %486 = vmatpush1.bf16.msra.mxu0 %v668_v56 }
  0x5e   :  { %487 = vmatprep.subr.bf16.mxu0 %v673_v57 }
  0x61   :  { %488 = vmatpush1.bf16.msra.mxu0 %v671_v58 }
  0x62   :  { %489 = vmatprep.subr.bf16.mxu0 %v676_v59 }
  0x65   :  { %490 = vmatpush1.bf16.msra.mxu0 %v674_v60 }
  0x66   :  { %491 = vmatprep.subr.bf16.mxu0 %v679_v61 }
  0x69   :  { %492 = vmatpush1.bf16.msra.mxu0 %v677_v63 }
  0x6a   :  { %493 = vmatprep.subr.bf16.mxu0 %v682_v0 }
  0x6d   :  { %494 = vmatpush1.bf16.msra.mxu0 %v680_v1 }
  0x6e   :  { %495 = vmatprep.subr.bf16.mxu0 %v685_v2 }
  0x71   :  { %496 = vmatpush1.bf16.msra.mxu0 %v683_v3 }
  0x72   :  { %497 = vmatprep.subr.bf16.mxu0 %v688_v4 }
  0x75   :  { %498 = vmatpush1.bf16.msra.mxu0 %v686_v5 }
 0x12b   :  { %v186_v11 = vpop.f32.mrb[0].mxu0 }
 0x12c   :  { %v187_v12 = vadd.f32 %v543_v10, %v186_v11  ;;  %v617_v13 = vpop.f32.mrb[1].mxu0 }
 0x12d   :  { %v189_v14 = vpop.f32.mrb[2].mxu0 }
 0x12e   :  { %194 = vadd.xlane.f32.xlu0 %v187_v12  ;;  %v618_v15 = vpop.f32.mrb[3].mxu0  ;;  %v196_v16 = vmul.f32 %v187_v12, %v187_v12 }
 0x132   :  { %197 = vadd.xlane.f32.xlu0 %v196_v16  ;;  %v563_v16 = vld [vmem:[%s917_s7] ss:$0 sm:$0xff] }
 0x1bb   :  { %v195_v25 = vpop.xlane.xlu0 %194 }
 0x1bc   :  { %v199_v26 = vmul.f32 0.03125, %v195_v25 }
 0x1be   :  { %v201_v28 = vmul.f32 %v199_v26, %v199_v26  ;;  %v206_v33 = vsub.f32 %v187_v12, %v199_v26 }
 0x1bf   :  { %v198_v27 = vpop.xlane.xlu0 %197 }
 0x1c0   :  { %v200_v29 = vmul.f32 0.03125, %v198_v27  ;;  %v393_v27 = vlaneseq }
 0x1c2   :  { %v202_v30 = vsub.f32 %v200_v29, %v201_v28  ;;  %v394_v28 = vshrl.u32 %v393_v27, 7 }
 0x1c4   :  { %v203_v31 = vmax.f32 %v202_v30, 0.0  ;;  %v395_v29 = vsub.s32 0, %v394_v28  ;;  %v391_v30 = vld [vmem:[%s920_s10] sm:$0x3] }
 0x1c6   :  { %v204_v32 = vadd.f32 1e-05, %v203_v31  ;;  %v399_v31 = vsub.s32 1, %v394_v28 }
 0x1c8   :  { %689 = vrsqrt.f32 %v204_v32  ;;  %v396_v32 = vrot.slane %v391_v30, %v395_v29 }
 0x1d2   :  { %v690_v34 = vpop.eup %689 }
 0x1d3   :  { %v207_v36 = vmul.f32 %v690_v34, %v206_v33  ;;  %v400_v33 = vrot.slane %v391_v30, %v399_v31 }
 0x1d5   :  { %v214_v38 = vmul.f32 %v552_v35, %v207_v36 }
 0x1d7   :  { %v221_v39 = vadd.f32 %v553_v37, %v214_v38 }
 0x1d9   :  { %v223_v40 = vmul.f32 0.70710677, %v221_v39  ;;  %v222_v42 = vmul.f32 0.5, %v221_v39 }
 0x1db   :  { %691 = verf.f32 %v223_v40 }
 0x1e5   :  { %v692_v41 = vpop.eup %691 }
 0x1e6   :  { %v225_v43 = vadd.f32 1.0, %v692_v41 }
 0x1e8   :  { %v226_v44 = vmul.f32 %v225_v43, %v222_v42 }
 0x1ea   :  { %v227_v45 = vpack.c.bf16 %v226_v44, %v226_v44 }
 0x1ec   :  { %636 = vmatmul.mubr.bf16.vlgmr.msra.gmra.mrb[0].mxu1 %v227_v45 }
 0x2bf   :  { %v333_v47 = vpop.f32.mrb[0].mxu1 }
 0x2c0   :  { %v334_v48 = vadd.f32 %v554_v46, %v333_v47  ;;  %v637_v49 = vpop.f32.mrb[1].mxu1 }
 0x2c1   :  { %v336_v50 = vpop.f32.mrb[2].mxu1 }
 0x2c2   :  { %341 = vadd.xlane.f32.xlu1 %v334_v48  ;;  %v638_v51 = vpop.f32.mrb[3].mxu1  ;;  %v343_v52 = vmul.f32 %v334_v48, %v334_v48 }
 0x2c6   :  { %344 = vadd.xlane.f32.xlu1 %v343_v52 }
 0x34f   :  { %v342_v6 = vpop.xlane.xlu1 %341 }
 0x350   :  { %v346_v7 = vmul.f32 0.03125, %v342_v6 }
 0x352   :  { %v348_v9 = vmul.f32 %v346_v7, %v346_v7  ;;  %v353_v14 = vsub.f32 %v334_v48, %v346_v7 }
 0x353   :  { %v345_v8 = vpop.xlane.xlu1 %344 }
 0x354   :  { %v347_v10 = vmul.f32 0.03125, %v345_v8 }
 0x356   :  { %v349_v11 = vsub.f32 %v347_v10, %v348_v9 }
 0x358   :  { %v350_v12 = vmax.f32 %v349_v11, 0.0 }
 0x35a   :  { %v351_v13 = vadd.f32 1e-05, %v350_v12 }
 0x35c   :  { %693 = vrsqrt.f32 %v351_v13 }
 0x366   :  { %v694_v15 = vpop.eup %693 }
 0x367   :  { %v354_v17 = vmul.f32 %v694_v15, %v353_v14 }
 0x369   :  { %v361_v19 = vmul.f32 %v563_v16, %v354_v17 }
 0x36b   :  { %v368_v20 = vadd.f32 %v564_v18, %v361_v19 }
 0x36d   :  { %v370_v21 = vmul.f32 0.70710677, %v368_v20  ;;  %v369_v23 = vmul.f32 0.5, %v368_v20 }
 0x36f   :  { %695 = verf.f32 %v370_v21 }
 0x379   :  { %v696_v22 = vpop.eup %695 }
 0x37a   :  { %v372_v24 = vadd.f32 1.0, %v696_v22 }
 0x37c   :  { %v373_v25 = vmul.f32 %v372_v24, %v369_v23 }
 0x37e   :  { %v374_v26 = vpack.c.bf16 %v373_v25, %v373_v25 }
 0x380   :  { %516 = vmatmul.mubr.bf16.vlgmr.msra.gmra.mrb[4].mxu0 %v374_v26 }
 0x453   :  { %v517_v34 = vpop.f32.mrb[4].mxu0 }
 0x454   :  { %v518_v35 = vadd.f32 %v517_v34, %v396_v32  ;;  %v519_v36 = vpop.f32.mrb[5].mxu0 }
 0x455   :  { %v520_v37 = vadd.f32 %v519_v36, %v400_v33  ;;  %v521_v38 = vpop.f32.mrb[6].mxu0 }
 0x456   :  { %535 = vst [vmem:[%s921_s11] sm:$0xff] %v518_v35  ;;  %v522_v39 = vpop.f32.mrb[7].mxu0 }
 0x457   :  { %v530_v40 = vmax.f32 %v520_v37, -10.0 }
 0x459   :  { %v532_v41 = vmin.f32 %v530_v40, 2.0 }
 0x45b   :  { %536 = vst [vmem:[%s921_s11 + $0x8] sm:$0xff] %v532_v41 }
 0x45c   :  { %541 = vsyncpa [#allocation3], 1 }
 0x45d   :  { %542 = vsyncpa [#allocation5], 1 }

</bundles_post_ra>
